<compile_context>
chip_gen: v5e
topology: v5e:2x2
jax: 0.10.0
libtpu: 0.0.40
codegen_flags: <defaults>
</compile_context>

<pallas_src>
import jax
import jax.numpy as jnp
from jax.experimental import pallas as pl
from jax.experimental.pallas import tpu as pltpu

EPS = 1e-5


def basic_block_kernel(x_ref, wr1_ref, wr2_ref, g1_ref, b1_ref, g2_ref, b2_ref,
                       sel_ref, selt_ref, out_ref, xp_ref, mp_ref):
    # x_ref   : (B, H, W*Cin)       lane-dense input row slabs (also the identity)
    # wr1_ref : (3, W*Cin,  W*Cout) block-Toeplitz row weights for conv1 (per dy)
    # wr2_ref : (3, W*Cout, W*Cout) block-Toeplitz row weights for conv2 (per dy)
    # g*/b*   : (1, Cout)           BN affine parameters
    # sel_ref : (W*Cout, Cout)      lane -> channel fold matrix (0/1)
    # selt_ref: (Cout, W*Cout)      channel -> lane broadcast matrix (0/1)
    # out_ref : (B*H, W*Cout)
    # xp_ref  : VMEM (B, H+2, W*Cin)  row-padded staging of x
    # mp_ref  : VMEM (B, H+2, W*Cout) row-padded staging of relu(bn1(conv1(x)))
    B, H, WCin = x_ref.shape
    WCout = wr1_ref.shape[-1]
    Cout = sel_ref.shape[-1]
    n = B * H * (WCout // Cout)           # elements per channel for BN stats
    inv_n = 1.0 / n

    xv = x_ref[...]                       # (B, H, W*Cin)

    # ---- stage x with a 1-row vertical halo (horizontal pad lives in the weights)
    xp_ref[:, 0:1, :] = jnp.zeros((B, 1, WCin), jnp.float32)
    xp_ref[:, H + 1:H + 2, :] = jnp.zeros((B, 1, WCin), jnp.float32)
    xp_ref[:, 1:H + 1, :] = xv

    def conv3x3_rows(src_ref, wr_ref):
        k = src_ref.shape[-1]
        acc = jnp.zeros((B * H, WCout), jnp.float32)
        for dy in range(3):               # 3 MXU matmuls, K = W*C, lane-dense output
            rows = src_ref[:, dy:dy + H, :].reshape(B * H, k)
            acc = acc + jnp.dot(rows, wr_ref[dy],
                                preferred_element_type=jnp.float32)
        return acc

    def batchnorm_affine(acc, g_ref, b_ref):
        # one-pass stats: per-lane sums folded to per-channel through `sel`
        s = jnp.sum(acc, axis=0, keepdims=True)             # (1, W*Cout)
        q = jnp.sum(acc * acc, axis=0, keepdims=True)       # (1, W*Cout)
        cs = jnp.dot(s, sel_ref[...], preferred_element_type=jnp.float32)
        cq = jnp.dot(q, sel_ref[...], preferred_element_type=jnp.float32)
        mean = cs * inv_n                                   # (1, Cout)
        var = cq * inv_n - mean * mean                      # biased variance
        scale = g_ref[...] * jax.lax.rsqrt(var + EPS)       # (1, Cout)
        shift = b_ref[...] - mean * scale
        scale_l = jnp.dot(scale, selt_ref[...], preferred_element_type=jnp.float32)
        shift_l = jnp.dot(shift, selt_ref[...], preferred_element_type=jnp.float32)
        return acc * scale_l + shift_l                      # (B*H, W*Cout)

    # ---- conv1 -> bn1 -> relu
    acc1 = conv3x3_rows(xp_ref, wr1_ref)
    y1 = jnp.maximum(batchnorm_affine(acc1, g1_ref, b1_ref), 0.0)

    # ---- stage mid activation (zero only the 2-row halo)
    mp_ref[:, 0:1, :] = jnp.zeros((B, 1, WCout), jnp.float32)
    mp_ref[:, H + 1:H + 2, :] = jnp.zeros((B, 1, WCout), jnp.float32)
    mp_ref[:, 1:H + 1, :] = y1.reshape(B, H, WCout)

    # ---- conv2 -> bn2 -> + identity -> relu
    acc2 = conv3x3_rows(mp_ref, wr2_ref)
    y2 = batchnorm_affine(acc2, g2_ref, b2_ref) + xv.reshape(B * H, WCin)
    out_ref[...] = jnp.maximum(y2, 0.0)


def conv_row_weights(w, width):
    """PyTorch (Cout, Cin, 3, 3) conv weight -> (3, width*Cin, width*Cout)
    block-Toeplitz row matrices with horizontal zero-padding folded in."""
    cout, cin = w.shape[0], w.shape[1]
    taps = jnp.transpose(w, (2, 3, 1, 0))                   # (kh, kw, Cin, Cout)
    xs = jnp.arange(width)
    per_dy = []
    for dy in range(3):
        blk = jnp.zeros((width, cin, width, cout), w.dtype)
        for dx in range(3):
            # place tap (dy,dx) at input column x_in = x_out + dx - 1 (dropped at edges)
            hit = (xs[:, None] == xs[None, :] + (dx - 1)).astype(w.dtype)  # (x_in, x_out)
            blk = blk + hit[:, None, :, None] * taps[dy, dx][None, :, None, :]
        per_dy.append(blk.reshape(width * cin, width * cout))
    return jnp.stack(per_dy, axis=0)


def basic_block(x_nchw, w1, w2, gamma1, beta1, gamma2, beta2):
    """x_nchw: (B, Cin, H, W) float32 (PyTorch layout). Returns (B, Cout, H, W)."""
    B, Cin, H, W = x_nchw.shape
    Cout = w1.shape[0]
    assert Cin == Cout, "identity residual requires Cin == Cout (no downsample)"

    # NCHW -> lane-dense (B, H, W*C) row slabs (channel fastest on the lane axis)
    x_rows = jnp.transpose(x_nchw, (0, 2, 3, 1)).reshape(B, H, W * Cin)

    wr1 = conv_row_weights(w1, W)                           # (3, W*Cin,  W*Cout)
    wr2 = conv_row_weights(w2, W)                           # (3, W*Cout, W*Cout)

    # per-channel fold / broadcast helpers over the interleaved lane layout
    selt = jnp.tile(jnp.eye(Cout, dtype=jnp.float32), (1, W))    # (Cout, W*Cout)
    sel = selt.T                                                 # (W*Cout, Cout)

    vmem = pl.BlockSpec(memory_space=pltpu.MemorySpace.VMEM)
    out_flat = pl.pallas_call(
        basic_block_kernel,
        out_shape=jax.ShapeDtypeStruct((B * H, W * Cout), jnp.float32),
        in_specs=[vmem] * 9,
        out_specs=vmem,
        scratch_shapes=[
            pltpu.VMEM((B, H + 2, W * Cin), jnp.float32),    # row-padded x
            pltpu.VMEM((B, H + 2, W * Cout), jnp.float32),   # row-padded mid act
        ],
        compiler_params=pltpu.CompilerParams(vmem_limit_bytes=16 * 1024 * 1024),
    )(x_rows, wr1, wr2,
      gamma1.reshape(1, Cout), beta1.reshape(1, Cout),
      gamma2.reshape(1, Cout), beta2.reshape(1, Cout),
      sel, selt)

    return jnp.transpose(out_flat.reshape(B, H, W, Cout), (0, 3, 1, 2))


def basic_block_reference(x, w1, w2, g1, b1, g2, b2):
    """Pure-JAX reference mirroring the PyTorch forward (training-mode BN)."""
    def conv(x, w):
        return jax.lax.conv_general_dilated(
            x, w, window_strides=(1, 1), padding=((1, 1), (1, 1)),
            dimension_numbers=("NCHW", "OIHW", "NCHW"))

    def bn(x, g, b):
        mean = jnp.mean(x, axis=(0, 2, 3), keepdims=True)
        var = jnp.mean((x - mean) ** 2, axis=(0, 2, 3), keepdims=True)
        return ((x - mean) * jax.lax.rsqrt(var + EPS)
                * g.reshape(1, -1, 1, 1) + b.reshape(1, -1, 1, 1))

    out = jax.nn.relu(bn(conv(x, w1), g1, b1))
    out = bn(conv(out, w2), g2, b2) + x
    return jax.nn.relu(out)


if __name__ == "__main__":
    key = jax.random.PRNGKey(0)
    kx, k1, k2 = jax.random.split(key, 3)

    B, C, H, W = 2, 4, 16, 16                     # in_channel = out_channel = 4
    x = jax.random.normal(kx, (B, C, H, W), jnp.float32)
    # Deterministic synthetic parameters (PyTorch shapes: (Cout, Cin, 3, 3))
    w1 = 0.1 * jax.random.normal(k1, (C, C, 3, 3), jnp.float32)
    w2 = 0.1 * jax.random.normal(k2, (C, C, 3, 3), jnp.float32)
    # BatchNorm affine params at PyTorch default init (weight=1, bias=0)
    gamma1 = jnp.ones((C,), jnp.float32)
    beta1 = jnp.zeros((C,), jnp.float32)
    gamma2 = jnp.ones((C,), jnp.float32)
    beta2 = jnp.zeros((C,), jnp.float32)

    out = jax.block_until_ready(basic_block(x, w1, w2, gamma1, beta1, gamma2, beta2))
    ref = basic_block_reference(x, w1, w2, gamma1, beta1, gamma2, beta2)

    assert out.shape == (B, C, H, W)
    assert jnp.allclose(out, ref, atol=1e-2, rtol=1e-2), float(jnp.max(jnp.abs(out - ref)))
    print("KERNEL_OK")
</pallas_src>

<mosaic_0001>
module attributes {stable_mosaic.version = 11 : i64} {
  func.func @basic_block_kernel(%arg0: memref<2x16x64xf32, #tpu.memory_space<vmem>>, %arg1: memref<3x64x64xf32, #tpu.memory_space<vmem>>, %arg2: memref<3x64x64xf32, #tpu.memory_space<vmem>>, %arg3: memref<1x4xf32, #tpu.memory_space<vmem>>, %arg4: memref<1x4xf32, #tpu.memory_space<vmem>>, %arg5: memref<1x4xf32, #tpu.memory_space<vmem>>, %arg6: memref<1x4xf32, #tpu.memory_space<vmem>>, %arg7: memref<64x4xf32, #tpu.memory_space<vmem>>, %arg8: memref<4x64xf32, #tpu.memory_space<vmem>>, %arg9: memref<32x64xf32, #tpu.memory_space<vmem>>, %arg10: memref<2x18x64xf32, #tpu.memory_space<vmem>>, %arg11: memref<2x18x64xf32, #tpu.memory_space<vmem>>) attributes {dimension_semantics = [], scalar_prefetch = 0 : i64, scratch_operands = 2 : i64, tpu.core_type = #tpu.core_type<tc>} {
    %c0 = arith.constant 0 : index
    %c0_0 = arith.constant 0 : index
    %c0_1 = arith.constant 0 : index
    %0 = vector.load %arg0[%c0, %c0_0, %c0_1] : memref<2x16x64xf32, #tpu.memory_space<vmem>>, vector<2x16x64xf32>
    %cst = arith.constant 0.000000e+00 : f32
    %1 = vector.broadcast %cst : f32 to vector<2x1x64xf32>
    %c0_2 = arith.constant 0 : index
    %c0_3 = arith.constant 0 : index
    %c0_4 = arith.constant 0 : index
    %2 = vector.load %arg10[%c0_2, %c0_3, %c0_4] : memref<2x18x64xf32, #tpu.memory_space<vmem>>, vector<2x1x64xf32>
    tpu.vector_store %arg10[%c0_2, %c0_3, %c0_4], %1 {strides = array<i32>} : memref<2x18x64xf32, #tpu.memory_space<vmem>>, vector<2x1x64xf32>,
    %cst_5 = arith.constant 0.000000e+00 : f32
    %3 = vector.broadcast %cst_5 : f32 to vector<2x1x64xf32>
    %c0_6 = arith.constant 0 : index
    %c17 = arith.constant 17 : index
    %c0_7 = arith.constant 0 : index
    %4 = vector.load %arg10[%c0_6, %c17, %c0_7] : memref<2x18x64xf32, #tpu.memory_space<vmem>>, vector<2x1x64xf32>
    tpu.vector_store %arg10[%c0_6, %c17, %c0_7], %3 {strides = array<i32>} : memref<2x18x64xf32, #tpu.memory_space<vmem>>, vector<2x1x64xf32>,
    %c0_8 = arith.constant 0 : index
    %c1 = arith.constant 1 : index
    %c0_9 = arith.constant 0 : index
    %5 = vector.load %arg10[%c0_8, %c1, %c0_9] : memref<2x18x64xf32, #tpu.memory_space<vmem>>, vector<2x16x64xf32>
    tpu.vector_store %arg10[%c0_8, %c1, %c0_9], %0 {strides = array<i32>} : memref<2x18x64xf32, #tpu.memory_space<vmem>>, vector<2x16x64xf32>,
    %cst_10 = arith.constant 0.000000e+00 : f32
    %6 = vector.broadcast %cst_10 : f32 to vector<32x64xf32>
    %c0_11 = arith.constant 0 : index
    %c0_12 = arith.constant 0 : index
    %c0_13 = arith.constant 0 : index
    %7 = vector.load %arg10[%c0_11, %c0_12, %c0_13] : memref<2x18x64xf32, #tpu.memory_space<vmem>>, vector<2x16x64xf32>
    %8 = vector.shape_cast %7 : vector<2x16x64xf32> to vector<32x64xf32>
    %c0_14 = arith.constant 0 : index
    %c0_15 = arith.constant 0 : index
    %c0_16 = arith.constant 0 : index
    %9 = vector.load %arg1[%c0_14, %c0_15, %c0_16] : memref<3x64x64xf32, #tpu.memory_space<vmem>>, vector<1x64x64xf32>
    %10 = vector.shape_cast %9 : vector<1x64x64xf32> to vector<64x64xf32>
    %cst_17 = arith.constant dense<0.000000e+00> : vector<32x64xf32>
    %11 = tpu.matmul %8, %10, %cst_17 {dimension_numbers = #tpu.dot_dimension_numbers<[1], [0], [0], [1], [0, 0, 1, 1], [], []>} : vector<32x64xf32>, vector<64x64xf32>, vector<32x64xf32> -> vector<32x64xf32>
    %12 = arith.addf %6, %11 : vector<32x64xf32>
    %c0_18 = arith.constant 0 : index
    %c1_19 = arith.constant 1 : index
    %c0_20 = arith.constant 0 : index
    %13 = vector.load %arg10[%c0_18, %c1_19, %c0_20] : memref<2x18x64xf32, #tpu.memory_space<vmem>>, vector<2x16x64xf32>
    %14 = vector.shape_cast %13 : vector<2x16x64xf32> to vector<32x64xf32>
    %c1_21 = arith.constant 1 : index
    %c0_22 = arith.constant 0 : index
    %c0_23 = arith.constant 0 : index
    %15 = vector.load %arg1[%c1_21, %c0_22, %c0_23] : memref<3x64x64xf32, #tpu.memory_space<vmem>>, vector<1x64x64xf32>
    %16 = vector.shape_cast %15 : vector<1x64x64xf32> to vector<64x64xf32>
    %cst_24 = arith.constant dense<0.000000e+00> : vector<32x64xf32>
    %17 = tpu.matmul %14, %16, %cst_24 {dimension_numbers = #tpu.dot_dimension_numbers<[1], [0], [0], [1], [0, 0, 1, 1], [], []>} : vector<32x64xf32>, vector<64x64xf32>, vector<32x64xf32> -> vector<32x64xf32>
    %18 = arith.addf %12, %17 : vector<32x64xf32>
    %c0_25 = arith.constant 0 : index
    %c2 = arith.constant 2 : index
    %c0_26 = arith.constant 0 : index
    %19 = vector.load %arg10[%c0_25, %c2, %c0_26] : memref<2x18x64xf32, #tpu.memory_space<vmem>>, vector<2x16x64xf32>
    %20 = vector.shape_cast %19 : vector<2x16x64xf32> to vector<32x64xf32>
    %c2_27 = arith.constant 2 : index
    %c0_28 = arith.constant 0 : index
    %c0_29 = arith.constant 0 : index
    %21 = vector.load %arg1[%c2_27, %c0_28, %c0_29] : memref<3x64x64xf32, #tpu.memory_space<vmem>>, vector<1x64x64xf32>
    %22 = vector.shape_cast %21 : vector<1x64x64xf32> to vector<64x64xf32>
    %cst_30 = arith.constant dense<0.000000e+00> : vector<32x64xf32>
    %23 = tpu.matmul %20, %22, %cst_30 {dimension_numbers = #tpu.dot_dimension_numbers<[1], [0], [0], [1], [0, 0, 1, 1], [], []>} : vector<32x64xf32>, vector<64x64xf32>, vector<32x64xf32> -> vector<32x64xf32>
    %24 = arith.addf %18, %23 : vector<32x64xf32>
    %cst_31 = arith.constant dense<0.000000e+00> : vector<64xf32>
    %25 = vector.multi_reduction <add>, %24, %cst_31 [0] : vector<32x64xf32> to vector<64xf32>
    %26 = vector.shape_cast %25 : vector<64xf32> to vector<1x64xf32>
    %27 = arith.mulf %24, %24 : vector<32x64xf32>
    %cst_32 = arith.constant dense<0.000000e+00> : vector<64xf32>
    %28 = vector.multi_reduction <add>, %27, %cst_32 [0] : vector<32x64xf32> to vector<64xf32>
    %29 = vector.shape_cast %28 : vector<64xf32> to vector<1x64xf32>
    %c0_33 = arith.constant 0 : index
    %c0_34 = arith.constant 0 : index
    %30 = vector.load %arg7[%c0_33, %c0_34] : memref<64x4xf32, #tpu.memory_space<vmem>>, vector<64x4xf32>
    %cst_35 = arith.constant dense<0.000000e+00> : vector<1x4xf32>
    %31 = tpu.matmul %26, %30, %cst_35 {dimension_numbers = #tpu.dot_dimension_numbers<[1], [0], [0], [1], [0, 0, 1, 1], [], []>} : vector<1x64xf32>, vector<64x4xf32>, vector<1x4xf32> -> vector<1x4xf32>
    %c0_36 = arith.constant 0 : index
    %c0_37 = arith.constant 0 : index
    %32 = vector.load %arg7[%c0_36, %c0_37] : memref<64x4xf32, #tpu.memory_space<vmem>>, vector<64x4xf32>
    %cst_38 = arith.constant dense<0.000000e+00> : vector<1x4xf32>
    %33 = tpu.matmul %29, %32, %cst_38 {dimension_numbers = #tpu.dot_dimension_numbers<[1], [0], [0], [1], [0, 0, 1, 1], [], []>} : vector<1x64xf32>, vector<64x4xf32>, vector<1x4xf32> -> vector<1x4xf32>
    %cst_39 = arith.constant 0.001953125 : f32
    %34 = vector.broadcast %cst_39 : f32 to vector<1x4xf32>
    %35 = arith.mulf %31, %34 : vector<1x4xf32>
    %cst_40 = arith.constant 0.001953125 : f32
    %36 = vector.broadcast %cst_40 : f32 to vector<1x4xf32>
    %37 = arith.mulf %33, %36 : vector<1x4xf32>
    %38 = arith.mulf %35, %35 : vector<1x4xf32>
    %39 = arith.subf %37, %38 : vector<1x4xf32>
    %c0_41 = arith.constant 0 : index
    %c0_42 = arith.constant 0 : index
    %40 = vector.load %arg3[%c0_41, %c0_42] : memref<1x4xf32, #tpu.memory_space<vmem>>, vector<1x4xf32>
    %cst_43 = arith.constant 9.99999974E-6 : f32
    %41 = vector.broadcast %cst_43 : f32 to vector<1x4xf32>
    %42 = arith.addf %39, %41 : vector<1x4xf32>
    %43 = math.rsqrt %42 : vector<1x4xf32>
    %44 = arith.mulf %40, %43 : vector<1x4xf32>
    %c0_44 = arith.constant 0 : index
    %c0_45 = arith.constant 0 : index
    %45 = vector.load %arg4[%c0_44, %c0_45] : memref<1x4xf32, #tpu.memory_space<vmem>>, vector<1x4xf32>
    %46 = arith.mulf %35, %44 : vector<1x4xf32>
    %47 = arith.subf %45, %46 : vector<1x4xf32>
    %c0_46 = arith.constant 0 : index
    %c0_47 = arith.constant 0 : index
    %48 = vector.load %arg8[%c0_46, %c0_47] : memref<4x64xf32, #tpu.memory_space<vmem>>, vector<4x64xf32>
    %cst_48 = arith.constant dense<0.000000e+00> : vector<1x64xf32>
    %49 = tpu.matmul %44, %48, %cst_48 {dimension_numbers = #tpu.dot_dimension_numbers<[1], [0], [0], [1], [0, 0, 1, 1], [], []>} : vector<1x4xf32>, vector<4x64xf32>, vector<1x64xf32> -> vector<1x64xf32>
    %c0_49 = arith.constant 0 : index
    %c0_50 = arith.constant 0 : index
    %50 = vector.load %arg8[%c0_49, %c0_50] : memref<4x64xf32, #tpu.memory_space<vmem>>, vector<4x64xf32>
    %cst_51 = arith.constant dense<0.000000e+00> : vector<1x64xf32>
    %51 = tpu.matmul %47, %50, %cst_51 {dimension_numbers = #tpu.dot_dimension_numbers<[1], [0], [0], [1], [0, 0, 1, 1], [], []>} : vector<1x4xf32>, vector<4x64xf32>, vector<1x64xf32> -> vector<1x64xf32>
    %52 = vector.broadcast %49 : vector<1x64xf32> to vector<32x64xf32>
    %53 = arith.mulf %24, %52 : vector<32x64xf32>
    %54 = vector.broadcast %51 : vector<1x64xf32> to vector<32x64xf32>
    %55 = arith.addf %53, %54 : vector<32x64xf32>
    %cst_52 = arith.constant 0.000000e+00 : f32
    %56 = vector.broadcast %cst_52 : f32 to vector<32x64xf32>
    %57 = arith.maximumf %55, %56 : vector<32x64xf32>
    %cst_53 = arith.constant 0.000000e+00 : f32
    %58 = vector.broadcast %cst_53 : f32 to vector<2x1x64xf32>
    %c0_54 = arith.constant 0 : index
    %c0_55 = arith.constant 0 : index
    %c0_56 = arith.constant 0 : index
    %59 = vector.load %arg11[%c0_54, %c0_55, %c0_56] : memref<2x18x64xf32, #tpu.memory_space<vmem>>, vector<2x1x64xf32>
    tpu.vector_store %arg11[%c0_54, %c0_55, %c0_56], %58 {strides = array<i32>} : memref<2x18x64xf32, #tpu.memory_space<vmem>>, vector<2x1x64xf32>,
    %cst_57 = arith.constant 0.000000e+00 : f32
    %60 = vector.broadcast %cst_57 : f32 to vector<2x1x64xf32>
    %c0_58 = arith.constant 0 : index
    %c17_59 = arith.constant 17 : index
    %c0_60 = arith.constant 0 : index
    %61 = vector.load %arg11[%c0_58, %c17_59, %c0_60] : memref<2x18x64xf32, #tpu.memory_space<vmem>>, vector<2x1x64xf32>
    tpu.vector_store %arg11[%c0_58, %c17_59, %c0_60], %60 {strides = array<i32>} : memref<2x18x64xf32, #tpu.memory_space<vmem>>, vector<2x1x64xf32>,
    %62 = vector.shape_cast %57 : vector<32x64xf32> to vector<2x16x64xf32>
    %c0_61 = arith.constant 0 : index
    %c1_62 = arith.constant 1 : index
    %c0_63 = arith.constant 0 : index
    %63 = vector.load %arg11[%c0_61, %c1_62, %c0_63] : memref<2x18x64xf32, #tpu.memory_space<vmem>>, vector<2x16x64xf32>
    tpu.vector_store %arg11[%c0_61, %c1_62, %c0_63], %62 {strides = array<i32>} : memref<2x18x64xf32, #tpu.memory_space<vmem>>, vector<2x16x64xf32>,
    %cst_64 = arith.constant 0.000000e+00 : f32
    %64 = vector.broadcast %cst_64 : f32 to vector<32x64xf32>
    %c0_65 = arith.constant 0 : index
    %c0_66 = arith.constant 0 : index
    %c0_67 = arith.constant 0 : index
    %65 = vector.load %arg11[%c0_65, %c0_66, %c0_67] : memref<2x18x64xf32, #tpu.memory_space<vmem>>, vector<2x16x64xf32>
    %66 = vector.shape_cast %65 : vector<2x16x64xf32> to vector<32x64xf32>
    %c0_68 = arith.constant 0 : index
    %c0_69 = arith.constant 0 : index
    %c0_70 = arith.constant 0 : index
    %67 = vector.load %arg2[%c0_68, %c0_69, %c0_70] : memref<3x64x64xf32, #tpu.memory_space<vmem>>, vector<1x64x64xf32>
    %68 = vector.shape_cast %67 : vector<1x64x64xf32> to vector<64x64xf32>
    %cst_71 = arith.constant dense<0.000000e+00> : vector<32x64xf32>
    %69 = tpu.matmul %66, %68, %cst_71 {dimension_numbers = #tpu.dot_dimension_numbers<[1], [0], [0], [1], [0, 0, 1, 1], [], []>} : vector<32x64xf32>, vector<64x64xf32>, vector<32x64xf32> -> vector<32x64xf32>
    %70 = arith.addf %64, %69 : vector<32x64xf32>
    %c0_72 = arith.constant 0 : index
    %c1_73 = arith.constant 1 : index
    %c0_74 = arith.constant 0 : index
    %71 = vector.load %arg11[%c0_72, %c1_73, %c0_74] : memref<2x18x64xf32, #tpu.memory_space<vmem>>, vector<2x16x64xf32>
    %72 = vector.shape_cast %71 : vector<2x16x64xf32> to vector<32x64xf32>
    %c1_75 = arith.constant 1 : index
    %c0_76 = arith.constant 0 : index
    %c0_77 = arith.constant 0 : index
    %73 = vector.load %arg2[%c1_75, %c0_76, %c0_77] : memref<3x64x64xf32, #tpu.memory_space<vmem>>, vector<1x64x64xf32>
    %74 = vector.shape_cast %73 : vector<1x64x64xf32> to vector<64x64xf32>
    %cst_78 = arith.constant dense<0.000000e+00> : vector<32x64xf32>
    %75 = tpu.matmul %72, %74, %cst_78 {dimension_numbers = #tpu.dot_dimension_numbers<[1], [0], [0], [1], [0, 0, 1, 1], [], []>} : vector<32x64xf32>, vector<64x64xf32>, vector<32x64xf32> -> vector<32x64xf32>
    %76 = arith.addf %70, %75 : vector<32x64xf32>
    %c0_79 = arith.constant 0 : index
    %c2_80 = arith.constant 2 : index
    %c0_81 = arith.constant 0 : index
    %77 = vector.load %arg11[%c0_79, %c2_80, %c0_81] : memref<2x18x64xf32, #tpu.memory_space<vmem>>, vector<2x16x64xf32>
    %78 = vector.shape_cast %77 : vector<2x16x64xf32> to vector<32x64xf32>
    %c2_82 = arith.constant 2 : index
    %c0_83 = arith.constant 0 : index
    %c0_84 = arith.constant 0 : index
    %79 = vector.load %arg2[%c2_82, %c0_83, %c0_84] : memref<3x64x64xf32, #tpu.memory_space<vmem>>, vector<1x64x64xf32>
    %80 = vector.shape_cast %79 : vector<1x64x64xf32> to vector<64x64xf32>
    %cst_85 = arith.constant dense<0.000000e+00> : vector<32x64xf32>
    %81 = tpu.matmul %78, %80, %cst_85 {dimension_numbers = #tpu.dot_dimension_numbers<[1], [0], [0], [1], [0, 0, 1, 1], [], []>} : vector<32x64xf32>, vector<64x64xf32>, vector<32x64xf32> -> vector<32x64xf32>
    %82 = arith.addf %76, %81 : vector<32x64xf32>
    %cst_86 = arith.constant dense<0.000000e+00> : vector<64xf32>
    %83 = vector.multi_reduction <add>, %82, %cst_86 [0] : vector<32x64xf32> to vector<64xf32>
    %84 = vector.shape_cast %83 : vector<64xf32> to vector<1x64xf32>
    %85 = arith.mulf %82, %82 : vector<32x64xf32>
    %cst_87 = arith.constant dense<0.000000e+00> : vector<64xf32>
    %86 = vector.multi_reduction <add>, %85, %cst_87 [0] : vector<32x64xf32> to vector<64xf32>
    %87 = vector.shape_cast %86 : vector<64xf32> to vector<1x64xf32>
    %c0_88 = arith.constant 0 : index
    %c0_89 = arith.constant 0 : index
    %88 = vector.load %arg7[%c0_88, %c0_89] : memref<64x4xf32, #tpu.memory_space<vmem>>, vector<64x4xf32>
    %cst_90 = arith.constant dense<0.000000e+00> : vector<1x4xf32>
    %89 = tpu.matmul %84, %88, %cst_90 {dimension_numbers = #tpu.dot_dimension_numbers<[1], [0], [0], [1], [0, 0, 1, 1], [], []>} : vector<1x64xf32>, vector<64x4xf32>, vector<1x4xf32> -> vector<1x4xf32>
    %c0_91 = arith.constant 0 : index
    %c0_92 = arith.constant 0 : index
    %90 = vector.load %arg7[%c0_91, %c0_92] : memref<64x4xf32, #tpu.memory_space<vmem>>, vector<64x4xf32>
    %cst_93 = arith.constant dense<0.000000e+00> : vector<1x4xf32>
    %91 = tpu.matmul %87, %90, %cst_93 {dimension_numbers = #tpu.dot_dimension_numbers<[1], [0], [0], [1], [0, 0, 1, 1], [], []>} : vector<1x64xf32>, vector<64x4xf32>, vector<1x4xf32> -> vector<1x4xf32>
    %cst_94 = arith.constant 0.001953125 : f32
    %92 = vector.broadcast %cst_94 : f32 to vector<1x4xf32>
    %93 = arith.mulf %89, %92 : vector<1x4xf32>
    %cst_95 = arith.constant 0.001953125 : f32
    %94 = vector.broadcast %cst_95 : f32 to vector<1x4xf32>
    %95 = arith.mulf %91, %94 : vector<1x4xf32>
    %96 = arith.mulf %93, %93 : vector<1x4xf32>
    %97 = arith.subf %95, %96 : vector<1x4xf32>
    %c0_96 = arith.constant 0 : index
    %c0_97 = arith.constant 0 : index
    %98 = vector.load %arg5[%c0_96, %c0_97] : memref<1x4xf32, #tpu.memory_space<vmem>>, vector<1x4xf32>
    %cst_98 = arith.constant 9.99999974E-6 : f32
    %99 = vector.broadcast %cst_98 : f32 to vector<1x4xf32>
    %100 = arith.addf %97, %99 : vector<1x4xf32>
    %101 = math.rsqrt %100 : vector<1x4xf32>
    %102 = arith.mulf %98, %101 : vector<1x4xf32>
    %c0_99 = arith.constant 0 : index
    %c0_100 = arith.constant 0 : index
    %103 = vector.load %arg6[%c0_99, %c0_100] : memref<1x4xf32, #tpu.memory_space<vmem>>, vector<1x4xf32>
    %104 = arith.mulf %93, %102 : vector<1x4xf32>
    %105 = arith.subf %103, %104 : vector<1x4xf32>
    %c0_101 = arith.constant 0 : index
    %c0_102 = arith.constant 0 : index
    %106 = vector.load %arg8[%c0_101, %c0_102] : memref<4x64xf32, #tpu.memory_space<vmem>>, vector<4x64xf32>
    %cst_103 = arith.constant dense<0.000000e+00> : vector<1x64xf32>
    %107 = tpu.matmul %102, %106, %cst_103 {dimension_numbers = #tpu.dot_dimension_numbers<[1], [0], [0], [1], [0, 0, 1, 1], [], []>} : vector<1x4xf32>, vector<4x64xf32>, vector<1x64xf32> -> vector<1x64xf32>
    %c0_104 = arith.constant 0 : index
    %c0_105 = arith.constant 0 : index
    %108 = vector.load %arg8[%c0_104, %c0_105] : memref<4x64xf32, #tpu.memory_space<vmem>>, vector<4x64xf32>
    %cst_106 = arith.constant dense<0.000000e+00> : vector<1x64xf32>
    %109 = tpu.matmul %105, %108, %cst_106 {dimension_numbers = #tpu.dot_dimension_numbers<[1], [0], [0], [1], [0, 0, 1, 1], [], []>} : vector<1x4xf32>, vector<4x64xf32>, vector<1x64xf32> -> vector<1x64xf32>
    %110 = vector.broadcast %107 : vector<1x64xf32> to vector<32x64xf32>
    %111 = arith.mulf %82, %110 : vector<32x64xf32>
    %112 = vector.broadcast %109 : vector<1x64xf32> to vector<32x64xf32>
    %113 = arith.addf %111, %112 : vector<32x64xf32>
    %114 = vector.shape_cast %0 : vector<2x16x64xf32> to vector<32x64xf32>
    %115 = arith.addf %113, %114 : vector<32x64xf32>
    %cst_107 = arith.constant 0.000000e+00 : f32
    %116 = vector.broadcast %cst_107 : f32 to vector<32x64xf32>
    %117 = arith.maximumf %115, %116 : vector<32x64xf32>
    %c0_108 = arith.constant 0 : index
    %c0_109 = arith.constant 0 : index
    %118 = vector.load %arg9[%c0_108, %c0_109] : memref<32x64xf32, #tpu.memory_space<vmem>>, vector<32x64xf32>
    tpu.vector_store %arg9[%c0_108, %c0_109], %117 {strides = array<i32>} : memref<32x64xf32, #tpu.memory_space<vmem>>, vector<32x64xf32>,
    return
  }
}

</mosaic_0001>

<bundles_post_ra>
// kernel: tpu_custom_call.1
= control target key start
LH: loop header
LB: loop body
LE: loop exit
PB: predicated region body
PF: predicated region fallthrough
CT: control target
= control target key end

     0   :  { %14 = vsyncpa [#allocation5], 0  ;;  %s1213_s0 = inlined_call_operand.vmem [shape: f32[2,16,64], index: 0, kind: input, shape index: {}]   ;;  %s1214_s1 = inlined_call_operand.hbm [shape: f32[3,64,64], index: 1, kind: input, shape index: {}]   ;;  %s1215_s2 = inlined_call_operand.hbm [shape: f32[3,64,64], index: 2, kind: input, shape index: {}]   ;;  %s1216_s3 = inlined_call_operand.vmem [shape: f32[1,4], index: 3, kind: input, shape index: {}]   ;;  %s1217_s4 = inlined_call_operand.vmem [shape: f32[1,4], index: 4, kind: input, shape index: {}]   ;;  %s1218_s5 = inlined_call_operand.vmem [shape: f32[1,4], index: 5, kind: input, shape index: {}]   ;;  %s1219_s6 = inlined_call_operand.vmem [shape: f32[1,4], index: 6, kind: input, shape index: {}]   ;;  %s1220_s7 = inlined_call_operand.vmem [shape: f32[64,4], index: 7, kind: input, shape index: {}]   ;;  %s1221_s8 = inlined_call_operand.vmem [shape: f32[4,64], index: 8, kind: input, shape index: {}]   ;;  %s1222_s9 = inlined_call_operand.hbm [shape: f32[32,64], index: 9, kind: output, shape index: {}]  }
   0x1   :  { %15 = vsyncpa [#allocation8], 0 }
   0x2   :  { %16 = vsyncpa [#allocation6], 0  ;;  %s23_s11 = sshll.u32 %s1214_s1, 4  ;;  %s907_s12 = smov [#allocation4]   ;;  %s24_s11 = int_to_ptr.hbm [resolvable:$true] %s23_s11 }
   0x3   :  { %s25_s13 = sshll.u32 %s907_s12, 4  ;;  %s36_s16 = sshll.u32 %s1215_s2, 4  ;;  %s26_s13 = int_to_ptr.vmem [resolvable:$true] %s25_s13  ;;  %s37_s16 = int_to_ptr.hbm [resolvable:$true] %s36_s16 }
   0x4   :  { %s908_s17 = smov 128   ;;  %s909_s18 = smov 8  }
   0x5   :  { %31 = dma.hbm_to_vmem [thread:$0]  %s24_s11, 3072, %s26_s13, [#allocation5], %s908_s17, %s908_s17, %s909_s18  }
   0x6   :  { %s910_s19 = smov [#allocation7]  }
   0x7   :  { %s38_s20 = sshll.u32 %s910_s19, 4  ;;  %s39_s20 = int_to_ptr.vmem [resolvable:$true] %s38_s20 }
   0x8   :  { %44 = dma.hbm_to_vmem [thread:$0]  %s37_s16, 3072, %s39_s20, [#allocation8], %s908_s17, %s908_s17, %s909_s18  }
   0x9   :  { %901 = dma.done.wait [#allocation5], 3072  }
   0xa   :  { %902 = vsyncadd [#allocation5], 4294964224 }
   0xb   :  { %903 = dma.done.wait [#allocation8], 3072  }
   0xc   :  { %904 = vsyncadd [#allocation8], 4294964224  ;;  %vm69_vm0 = vcmask 516096   ;;  %v911_v0 = vmov 0.0   ;;  %v198_v1 = vld [vmem:[#allocation4 + $0xb8] sm:$0xff]  ;;  %v197_v2 = vld [vmem:[#allocation4 + $0xb0] sm:$0xff] }
   0xd   :  { %70 = vst.msk [vmem:[#allocation2] sm:$0x1] %vm69_vm0, %v911_v0  ;;  %v103_v3 = vld [vmem:[#allocation4 + $0x78] sm:$0xff]  ;;  %219 = vmatpush.msra.mxu2 %v198_v1  ;;  %v102_v5 = vld [vmem:[#allocation4 + $0x70] sm:$0xff]  ;;  %v196_v6 = vld [vmem:[#allocation4 + $0xa8] sm:$0xff]  ;;  %vm74_vm1 = vcmask 523264  }
   0xe   :  { %71 = vst.msk [vmem:[#allocation2 + $0x18] sm:$0x1] %vm69_vm0, %v911_v0  ;;  %124 = vmatpush.msra.mxu0 %v103_v3  ;;  %v90_v4 = vld [vmem:[#allocation4 + $0x38] sm:$0xff]  ;;  %v89_v7 = vld [vmem:[#allocation4 + $0x30] sm:$0xff]  ;;  %v101_v8 = vld [vmem:[#allocation4 + $0x68] sm:$0xff]  ;;  %vm353_vm2 = vcmask 1043456  }
   0xf   :  { %72 = vst.msk [vmem:[#allocation2 + $0x11] sm:$0x1] %vm69_vm0, %v911_v0  ;;  %165 = vmatpush.msra.mxu1 %v90_v4  ;;  %220 = vmatpush.msra.mxu2 %v197_v2  ;;  %v88_v9 = vld [vmem:[#allocation4 + $0x28] sm:$0xff]  ;;  %v195_v10 = vld [vmem:[#allocation4 + $0xa0] sm:$0xff]  ;;  %v194_v13 = vld [vmem:[#allocation4 + $0x98] sm:$0xff]  ;;  %vm349_vm6 = vcmask 31744  }
  0x10   :  { %73 = vst.msk [vmem:[#allocation2 + $0x29] sm:$0x1] %vm69_vm0, %v911_v0  ;;  %125 = vmatpush.msra.mxu0 %v102_v5  ;;  %v100_v11 = vld [vmem:[#allocation4 + $0x60] sm:$0xff]  ;;  %v99_v14 = vld [vmem:[#allocation4 + $0x58] sm:$0xff]  ;;  %v991_v17 = vld [vmem:[%s1213_s0 + $0x8] sm:$0xff]  ;;  %s769_s30 = sshll.u32 %s1222_s9, 4  ;;  %s770_s30 = int_to_ptr.hbm [resolvable:$true] %s769_s30 }
  0x11   :  { %414 = vst.msk [vmem:[#allocation3] sm:$0x1] %vm69_vm0, %v911_v0  ;;  %166 = vmatpush.msra.mxu1 %v89_v7  ;;  %221 = vmatpush.msra.mxu2 %v196_v6  ;;  %v87_v12 = vld [vmem:[#allocation4 + $0x20] sm:$0xff]  ;;  %v86_v16 = vld [vmem:[#allocation4 + $0x18] sm:$0xff]  ;;  %v193_v18 = vld [vmem:[#allocation4 + $0x90] sm:$0xff] }
  0x12   :  { %415 = vst.msk [vmem:[#allocation3 + $0x18] sm:$0x1] %vm69_vm0, %v911_v0  ;;  %126 = vmatpush.msra.mxu0 %v101_v8  ;;  %v986_v15 = vld [vmem:[%s1213_s0] sm:$0xff]  ;;  %v98_v19 = vld [vmem:[#allocation4 + $0x50] sm:$0xff]  ;;  %v1005_v22 = vld [vmem:[%s1213_s0 + $0x18] sm:$0xff] }
  0x13   :  { %416 = vst.msk [vmem:[#allocation3 + $0x11] sm:$0x1] %vm69_vm0, %v911_v0  ;;  %167 = vmatpush.msra.mxu1 %v88_v9  ;;  %222 = vmatpush.msra.mxu2 %v195_v10  ;;  %v1000_v20 = vld [vmem:[%s1213_s0 + $0x10] sm:$0xff]  ;;  %v192_v23 = vld [vmem:[#allocation4 + $0x88] sm:$0xff]  ;;  %v191_v26 = vld [vmem:[#allocation4 + $0x80] sm:$0xff] }
  0x14   :  { %417 = vst.msk [vmem:[#allocation3 + $0x29] sm:$0x1] %vm69_vm0, %v911_v0  ;;  %127 = vmatpush.msra.mxu0 %v100_v11  ;;  %v85_v21 = vld [vmem:[#allocation4 + $0x10] sm:$0xff]  ;;  %v97_v24 = vld [vmem:[#allocation4 + $0x48] sm:$0xff]  ;;  %v96_v27 = vld [vmem:[#allocation4 + $0x40] sm:$0xff] }
  0x15   :  { %75 = vst.msk [vmem:[#allocation2 + $0x1] sm:$0xff] %vm74_vm1, %v986_v15  ;;  %168 = vmatpush.msra.mxu1 %v87_v12  ;;  %223 = vmatpush.msra.mxu2 %v194_v13  ;;  %v84_v25 = vld [vmem:[#allocation4 + $0x8] sm:$0xff]  ;;  %v83_v28 = vld [vmem:[#allocation4] sm:$0xff]  ;;  %v1026_v41 = vld [vmem:[%s1220_s7 + $0x38] sm:$0xff] }
  0x16   :  { %76 = vst.msk [vmem:[#allocation2 + $0x9] sm:$0xff] %vm74_vm1, %v991_v17  ;;  %128 = vmatpush.msra.mxu0 %v99_v14  ;;  %293 = vmatpush.msra.mxu3 %v1026_v41  ;;  %v1032_v42 = vld [vmem:[%s1220_s7 + $0x30] sm:$0xff]  ;;  %v1038_v43 = vld [vmem:[%s1220_s7 + $0x28] sm:$0xff]  ;;  %v1044_v44 = vld [vmem:[%s1220_s7 + $0x20] sm:$0xff] }
  0x17   :  { %77 = vst.msk [vmem:[#allocation2 + $0x19] sm:$0xff] %vm74_vm1, %v1000_v20  ;;  %169 = vmatpush.msra.mxu1 %v86_v16  ;;  %224 = vmatpush.msra.mxu2 %v193_v18  ;;  %v1050_v47 = vld [vmem:[%s1220_s7 + $0x18] sm:$0xff]  ;;  %v1056_v48 = vld [vmem:[%s1220_s7 + $0x10] sm:$0xff]  ;;  %v1062_v49 = vld [vmem:[%s1220_s7 + $0x8] sm:$0xff] }
  0x18   :  { %78 = vst.msk [vmem:[#allocation2 + $0x21] sm:$0xff] %vm74_vm1, %v1005_v22  ;;  %129 = vmatpush.msra.mxu0 %v98_v19  ;;  %294 = vmatpush.msra.mxu3 %v1032_v42  ;;  %v1068_v51 = vld [vmem:[%s1220_s7] sm:$0xff] }
  0x19   :  { %170 = vmatpush.msra.mxu1 %v85_v21  ;;  %225 = vmatpush.msra.mxu2 %v192_v23 }
  0x1a   :  { %130 = vmatpush.msra.mxu0 %v97_v24  ;;  %295 = vmatpush.msra.mxu3 %v1038_v43 }
  0x1b   :  { %171 = vmatpush.msra.mxu1 %v84_v25  ;;  %226 = vmatpush.msra.mxu2 %v191_v26 }
  0x1c   :  { %v91_v29 = vld [vmem:[#allocation2 + $0x1] sm:$0xff]  ;;  %131 = vmatpush.msra.mxu0 %v96_v27  ;;  %296 = vmatpush.msra.mxu3 %v1044_v44 }
  0x1d   :  { %v79_v30 = vld [vmem:[#allocation2] sm:$0xff]  ;;  %172 = vmatpush.msra.mxu1 %v83_v28  ;;  %783 = vmatmul.msk.f32.vlgmr.msra.gmra.mxu0 %vm74_vm1, %v91_v29  ;;  %v187_v32 = vld [vmem:[#allocation2 + $0xa] sm:$0xff] }
  0x1e   :  { %v186_v31 = vld [vmem:[#allocation2 + $0x2] sm:$0xff]  ;;  %787 = vmatmul.msk.f32.vlgmr.msra.gmra.mxu1 %vm74_vm1, %v79_v30  ;;  %v93_v36 = vld [vmem:[#allocation2 + $0x19] sm:$0xff]  ;;  %297 = vmatpush.msra.mxu3 %v1050_v47 }
  0x1f   :  { %791 = vmatmul.msk.f32.vlgmr.msra.gmra.mxu2 %vm74_vm1, %v186_v31  ;;  %v92_v33 = vld [vmem:[#allocation2 + $0x9] sm:$0xff]  ;;  %v188_v35 = vld [vmem:[#allocation2 + $0x1a] sm:$0xff] }
  0x20   :  { %v80_v34 = vld [vmem:[#allocation2 + $0x8] sm:$0xff]  ;;  %v81_v37 = vld [vmem:[#allocation2 + $0x18] sm:$0xff]  ;;  %v82_v40 = vld [vmem:[#allocation2 + $0x20] sm:$0xff]  ;;  %298 = vmatpush.msra.mxu3 %v1056_v48 }
  0x21   :  { %v189_v38 = vld [vmem:[#allocation2 + $0x22] sm:$0xff] }
  0x22   :  { %v94_v39 = vld [vmem:[#allocation2 + $0x21] sm:$0xff]  ;;  %299 = vmatpush.msra.mxu3 %v1062_v49 }
  0x24   :  { %300 = vmatpush.msra.mxu3 %v1068_v51 }
  0x25   :  { %784 = vmatmul.msk.f32.gmra.mxu0 %vm74_vm1, %v92_v33 }
  0x26   :  { %788 = vmatmul.msk.f32.gmra.mxu1 %vm74_vm1, %v80_v34  ;;  %316 = vmatpush.msrb.mxu3 %v1026_v41 }
  0x27   :  { %792 = vmatmul.msk.f32.gmra.mxu2 %vm74_vm1, %v187_v32 }
  0x28   :  { %317 = vmatpush.msrb.mxu3 %v1032_v42 }
  0x2a   :  { %318 = vmatpush.msrb.mxu3 %v1038_v43 }
  0x2c   :  { %319 = vmatpush.msrb.mxu3 %v1044_v44 }
  0x2d   :  { %785 = vmatmul.msk.f32.gmra.mxu0 %vm74_vm1, %v93_v36 }
  0x2e   :  { %789 = vmatmul.msk.f32.gmra.mxu1 %vm74_vm1, %v81_v37  ;;  %320 = vmatpush.msrb.mxu3 %v1050_v47 }
  0x2f   :  { %793 = vmatmul.msk.f32.gmra.mxu2 %vm74_vm1, %v188_v35 }
  0x30   :  { %321 = vmatpush.msrb.mxu3 %v1056_v48 }
  0x32   :  { %322 = vmatpush.msrb.mxu3 %v1062_v49 }
  0x34   :  { %323 = vmatpush.msrb.mxu3 %v1068_v51 }
  0x35   :  { %786 = vmatmul.msk.f32.gmra.mxu0 %vm74_vm1, %v94_v39 }
  0x36   :  { %790 = vmatmul.msk.f32.gmra.mxu1 %vm74_vm1, %v82_v40  ;;  %v348_v40 = vld [vmem:[%s1221_s8] sm:$0xf] }
  0x37   :  { %794 = vmatmul.msk.f32.gmra.mxu2 %vm74_vm1, %v189_v38  ;;  %799 = vmatpush.msk.msrb.mxu0 %vm353_vm2, %v348_v40 }
  0x39   :  { %636 = vmatpush.msra.mxu0 %v1026_v41 }
  0x3b   :  { %637 = vmatpush.msra.mxu0 %v1032_v42 }
  0x3d   :  { %638 = vmatpush.msra.mxu0 %v1038_v43 }
  0x3f   :  { %639 = vmatpush.msra.mxu0 %v1044_v44 }
  0x41   :  { %640 = vmatpush.msra.mxu0 %v1050_v47 }
  0x43   :  { %641 = vmatpush.msra.mxu0 %v1056_v48 }
  0x45   :  { %642 = vmatpush.msra.mxu0 %v1062_v49 }
  0x47   :  { %643 = vmatpush.msra.mxu0 %v1068_v51 }
  0x9a   :  { %v133_v45 = vpop.f32.mrf.mxu0 }
  0x9b   :  { %v174_v46 = vpop.f32.mrf.mxu1 }
  0x9c   :  { %v175_v58 = vadd.f32 %v174_v46, %v133_v45  ;;  %v433_v46 = vld [vmem:[#allocation7 + $0x38] sm:$0xff] }
  0x9d   :  { %508 = vmatpush.msrb.mxu2 %v433_v46 }
  0xa2   :  { %v228_v50 = vpop.f32.mrf.mxu2  ;;  %v136_v52 = vpop.f32.mrf.mxu0 }
  0xa3   :  { %v177_v53 = vpop.f32.mrf.mxu1  ;;  %v1080_v62 = vadd.f32 %v228_v50, %v175_v58  ;;  %v432_v50 = vld [vmem:[#allocation7 + $0x30] sm:$0xff] }
  0xa4   :  { %v178_v55 = vadd.f32 %v177_v53, %v136_v52  ;;  %v446_v52 = vld [vmem:[#allocation7 + $0x78] sm:$0xff]  ;;  %509 = vmatpush.msrb.mxu2 %v432_v50 }
  0xa5   :  { %v257_v3 = vmul.f32 %v1080_v62, %v1080_v62  ;;  %v244_v7 = vsel %vm74_vm1, %v1080_v62, 0.0  ;;  %467 = vmatpush.msrb.mxu1 %v446_v52 }
  0xa7   :  { %v261_v12 = vsel %vm74_vm1, %v257_v3, 0.0 }
  0xaa   :  { %v231_v54 = vpop.f32.mrf.mxu2  ;;  %v139_v56 = vpop.f32.mrf.mxu0 }
  0xab   :  { %v180_v57 = vpop.f32.mrf.mxu1  ;;  %v1077_v60 = vadd.f32 %v231_v54, %v178_v55  ;;  %v445_v54 = vld [vmem:[#allocation7 + $0x70] sm:$0xff] }
  0xac   :  { %v181_v59 = vadd.f32 %v180_v57, %v139_v56  ;;  %v431_v57 = vld [vmem:[#allocation7 + $0x28] sm:$0xff]  ;;  %468 = vmatpush.msrb.mxu1 %v445_v54 }
  0xad   :  { %v258_v0 = vmul.f32 %v1077_v60, %v1077_v60  ;;  %v245_v4 = vsel %vm74_vm1, %v1077_v60, 0.0  ;;  %510 = vmatpush.msrb.mxu2 %v431_v57 }
  0xae   :  { %v246_v10 = vadd.f32 %v245_v4, %v244_v7 }
  0xaf   :  { %v262_v8 = vsel %vm74_vm1, %v258_v0, 0.0 }
  0xb0   :  { %v263_v16 = vadd.f32 %v262_v8, %v261_v12  ;;  %v444_v12 = vld [vmem:[#allocation7 + $0x68] sm:$0xff] }
  0xb1   :  { %469 = vmatpush.msrb.mxu1 %v444_v12 }
  0xb2   :  { %v234_v61 = vpop.f32.mrf.mxu2  ;;  %v142_v1 = vpop.f32.mrf.mxu0 }
  0xb3   :  { %v1082_v63 = vadd.f32 %v234_v61, %v181_v59  ;;  %v183_v2 = vpop.f32.mrf.mxu1  ;;  %v430_v59 = vld [vmem:[#allocation7 + $0x20] sm:$0xff] }
  0xb4   :  { %v184_v6 = vadd.f32 %v183_v2, %v142_v1  ;;  %511 = vmatpush.msrb.mxu2 %v430_v59 }
  0xb5   :  { %v259_v5 = vmul.f32 %v1082_v63, %v1082_v63  ;;  %v247_v9 = vsel %vm74_vm1, %v1082_v63, 0.0 }
  0xb6   :  { %v248_v18 = vadd.f32 %v247_v9, %v246_v10  ;;  %v345_v9 = vld [vmem:[%s1217_s4] sm:$0x1] }
  0xb7   :  { %v264_v13 = vsel %vm74_vm1, %v259_v5, 0.0  ;;  %v332_v5 = vld [vmem:[%s1216_s3] sm:$0x1] }
  0xb8   :  { %v265_v23 = vadd.f32 %v264_v13, %v263_v16  ;;  %v541_v13 = vld [vmem:[#allocation7 + $0xb8] sm:$0xff]  ;;  %v540_v16 = vld [vmem:[#allocation7 + $0xb0] sm:$0xff] }
  0xba   :  { %v237_v11 = vpop.f32.mrf.mxu2 }
  0xbb   :  { %v1100_v14 = vadd.f32 %v237_v11, %v184_v6 }
  0xbd   :  { %v249_v19 = vsel %vm74_vm1, %v1100_v14, 0.0  ;;  %v260_v21 = vmul.f32 %v1100_v14, %v1100_v14 }
  0xbe   :  { %v250_v24 = vadd.f32 %v249_v19, %v248_v18  ;;  %v442_v18 = vld [vmem:[#allocation7 + $0x58] sm:$0xff]  ;;  %v536_v19 = vld [vmem:[#allocation7 + $0x90] sm:$0xff] }
  0xbf   :  { %v266_v25 = vsel %vm74_vm1, %v260_v21, 0.0  ;;  %v440_v21 = vld [vmem:[#allocation7 + $0x48] sm:$0xff] }
  0xc0   :  { %v251_v26 = vrot.slane %v250_v24, 4  ;;  %v267_v27 = vadd.f32 %v266_v25, %v265_v23  ;;  %v535_v23 = vld [vmem:[#allocation7 + $0x88] sm:$0xff]  ;;  %v439_v25 = vld [vmem:[#allocation7 + $0x40] sm:$0xff] }
  0xc2   :  { %v268_v28 = vrot.slane %v267_v27, 4  ;;  %v252_v29 = vadd.f32 %v251_v26, %v250_v24  ;;  %v426_v24 = vld [vmem:[#allocation7] sm:$0xff] }
  0xc3   :  { %v534_v26 = vld [vmem:[#allocation7 + $0x80] sm:$0xff] }
  0xc4   :  { %v269_v30 = vadd.f32 %v268_v28, %v267_v27  ;;  %v253_v31 = vrot.slane %v252_v29, 2 }
  0xc6   :  { %v254_v32 = vadd.f32 %v253_v31, %v252_v29  ;;  %v270_v33 = vrot.slane %v269_v30, 2 }
  0xc8   :  { %v255_v34 = vrot.slane %v254_v32, 1  ;;  %v271_v36 = vadd.f32 %v270_v33, %v269_v30 }
  0xca   :  { %v256_v35 = vadd.f32 %v255_v34, %v254_v32  ;;  %v272_v37 = vrot.slane %v271_v36, 1 }
  0xcc   :  { %795 = vmatmul.msk.f32.vlgmr.msra.gmra.mxu3 %vm74_vm1, %v256_v35  ;;  %v273_v38 = vadd.f32 %v272_v37, %v271_v36 }
  0xcd   :  { %797 = vmatpush.msk.msra.mxu3 %vm353_vm2, %v348_v40 }
  0xd4   :  { %796 = vmatmul.msk.f32.vlgmr.msrb.gmra.mxu3 %vm74_vm1, %v273_v38 }
  0xd5   :  { %562 = vmatpush.msrb.mxu3 %v541_v13 }
  0xd7   :  { %563 = vmatpush.msrb.mxu3 %v540_v16 }
 0x14f   :  { %v302_v39 = vpop.f32.mrf.mxu3 }
 0x150   :  { %v328_v45 = vmul.f32 0.001953125, %v302_v39 }
 0x152   :  { %v330_v55 = vmul.f32 %v328_v45, %v328_v45 }
 0x157   :  { %v325_v53 = vpop.f32.mrf.mxu3 }
 0x158   :  { %v329_v56 = vmul.f32 0.001953125, %v325_v53 }
 0x15a   :  { %v331_v58 = vsub.f32 %v329_v56, %v330_v55 }
 0x15c   :  { %v333_v61 = vadd.f32 1e-05, %v331_v58 }
 0x15e   :  { %825 = vrsqrt.f32 %v333_v61  ;;  %vm340_vm4 = vweird.f32 %v333_v61 }
 0x164   :  { %v826_v0 = vpop.eup %825 }
 0x165   :  { %v335_v1 = vmul.f32 %v826_v0, %v333_v61  ;;  %vm341_vm3 = vweird.f32 %v826_v0 }
 0x166   :  { %vm342_vm5 = vmor %vm340_vm4, %vm341_vm3 }
 0x167   :  { %v336_v2 = vmul.f32 %v826_v0, %v335_v1 }
 0x169   :  { %v337_v3 = vmul.f32 0.5, %v336_v2 }
 0x16b   :  { %v338_v4 = vsub.f32 1.5, %v337_v3 }
 0x16d   :  { %v339_v6 = vmul.f32 %v826_v0, %v338_v4 }
 0x16f   :  { %v343_v7 = vsel %vm342_vm5, %v826_v0, %v339_v6 }
 0x170   :  { %v344_v8 = vmul.f32 %v343_v7, %v332_v5 }
 0x172   :  { %798 = vmatmul.msk.f32.vlgmr.msra.gmra.mxu3 %vm349_vm6, %v344_v8  ;;  %v346_v10 = vmul.f32 %v344_v8, %v328_v45 }
 0x174   :  { %v347_v11 = vsub.f32 %v345_v9, %v346_v10 }
 0x176   :  { %800 = vmatmul.msk.f32.vlgmr.msrb.gmra.mxu0 %vm349_vm6, %v347_v11 }
 0x177   :  { %659 = vmatpush.msrb.mxu0 %v1026_v41  ;;  %v539_v41 = vld [vmem:[#allocation7 + $0xa8] sm:$0xff] }
 0x178   :  { %564 = vmatpush.msrb.mxu3 %v539_v41 }
 0x179   :  { %660 = vmatpush.msrb.mxu0 %v1032_v42  ;;  %v443_v42 = vld [vmem:[#allocation7 + $0x60] sm:$0xff] }
 0x17a   :  { %470 = vmatpush.msrb.mxu1 %v443_v42 }
 0x17b   :  { %661 = vmatpush.msrb.mxu0 %v1038_v43  ;;  %v538_v43 = vld [vmem:[#allocation7 + $0xa0] sm:$0xff] }
 0x17c   :  { %565 = vmatpush.msrb.mxu3 %v538_v43  ;;  %471 = vmatpush.msrb.mxu1 %v442_v18 }
 0x17d   :  { %662 = vmatpush.msrb.mxu0 %v1044_v44  ;;  %v429_v44 = vld [vmem:[#allocation7 + $0x18] sm:$0xff] }
 0x17e   :  { %512 = vmatpush.msrb.mxu2 %v429_v44 }
 0x17f   :  { %663 = vmatpush.msrb.mxu0 %v1050_v47  ;;  %v428_v47 = vld [vmem:[#allocation7 + $0x10] sm:$0xff] }
 0x180   :  { %513 = vmatpush.msrb.mxu2 %v428_v47 }
 0x181   :  { %664 = vmatpush.msrb.mxu0 %v1056_v48  ;;  %v537_v48 = vld [vmem:[#allocation7 + $0x98] sm:$0xff] }
 0x182   :  { %566 = vmatpush.msrb.mxu3 %v537_v48 }
 0x183   :  { %665 = vmatpush.msrb.mxu0 %v1062_v49  ;;  %v441_v49 = vld [vmem:[#allocation7 + $0x50] sm:$0xff] }
 0x184   :  { %472 = vmatpush.msrb.mxu1 %v441_v49  ;;  %567 = vmatpush.msrb.mxu3 %v536_v19 }
 0x185   :  { %666 = vmatpush.msrb.mxu0 %v1068_v51  ;;  %v427_v51 = vld [vmem:[#allocation7 + $0x8] sm:$0xff] }
 0x186   :  { %514 = vmatpush.msrb.mxu2 %v427_v51  ;;  %473 = vmatpush.msrb.mxu1 %v440_v21 }
 0x187   :  { %568 = vmatpush.msrb.mxu3 %v535_v23 }
 0x188   :  { %515 = vmatpush.msrb.mxu2 %v426_v24  ;;  %474 = vmatpush.msrb.mxu1 %v439_v25 }
 0x189   :  { %569 = vmatpush.msrb.mxu3 %v534_v26 }
 0x1f3   :  { %v397_v27 = vpop.f32.mrf.mxu0 }
 0x1f4   :  { %v405_v30 = vperm.slane %v397_v27, 0 }
 0x1f5   :  { %v374_v28 = vpop.f32.mrf.mxu3 }
 0x1f6   :  { %v400_v29 = vperm.slane %v374_v28, 0 }
 0x1f8   :  { %v401_v31 = vmul.f32 %v400_v29, %v1080_v62  ;;  %v402_v32 = vmul.f32 %v400_v29, %v1077_v60  ;;  %v403_v33 = vmul.f32 %v400_v29, %v1082_v63  ;;  %v404_v34 = vmul.f32 %v400_v29, %v1100_v14 }
 0x1fa   :  { %v406_v35 = vadd.f32 %v405_v30, %v401_v31  ;;  %v407_v36 = vadd.f32 %v405_v30, %v402_v32  ;;  %v408_v37 = vadd.f32 %v405_v30, %v403_v33  ;;  %v409_v38 = vadd.f32 %v405_v30, %v404_v34 }
 0x1fc   :  { %v410_v39 = vmax.f32 %v406_v35, 0.0  ;;  %v411_v40 = vmax.f32 %v407_v36, 0.0  ;;  %v412_v45 = vmax.f32 %v408_v37, 0.0  ;;  %v413_v46 = vmax.f32 %v409_v38, 0.0 }
 0x1fe   :  { %418 = vst.msk [vmem:[#allocation3 + $0x1] sm:$0xff] %vm74_vm1, %v410_v39 }
 0x1ff   :  { %419 = vst.msk [vmem:[#allocation3 + $0x9] sm:$0xff] %vm74_vm1, %v411_v40 }
 0x200   :  { %420 = vst.msk [vmem:[#allocation3 + $0x19] sm:$0xff] %vm74_vm1, %v412_v45 }
 0x201   :  { %421 = vst.msk [vmem:[#allocation3 + $0x21] sm:$0xff] %vm74_vm1, %v413_v46 }
 0x205   :  { %v434_v60 = vld [vmem:[#allocation3 + $0x1] sm:$0xff] }
 0x206   :  { %v422_v62 = vld [vmem:[#allocation3] sm:$0xff]  ;;  %801 = vmatmul.msk.f32.vlgmr.msrb.gmra.mxu1 %vm74_vm1, %v434_v60  ;;  %v435_v14 = vld [vmem:[#allocation3 + $0x9] sm:$0xff] }
 0x207   :  { %805 = vmatmul.msk.f32.vlgmr.msrb.gmra.mxu2 %vm74_vm1, %v422_v62  ;;  %v529_v63 = vld [vmem:[#allocation3 + $0x2] sm:$0xff]  ;;  %v530_v52 = vld [vmem:[#allocation3 + $0xa] sm:$0xff]  ;;  %v436_v53 = vld [vmem:[#allocation3 + $0x19] sm:$0xff] }
 0x208   :  { %809 = vmatmul.msk.f32.vlgmr.msrb.gmra.mxu3 %vm74_vm1, %v529_v63  ;;  %v423_v50 = vld [vmem:[#allocation3 + $0x8] sm:$0xff]  ;;  %v424_v54 = vld [vmem:[#allocation3 + $0x18] sm:$0xff]  ;;  %v425_v57 = vld [vmem:[#allocation3 + $0x20] sm:$0xff] }
 0x209   :  { %v531_v55 = vld [vmem:[#allocation3 + $0x1a] sm:$0xff]  ;;  %v532_v58 = vld [vmem:[#allocation3 + $0x22] sm:$0xff]  ;;  %v691_v63 = vld [vmem:[%s1221_s8] sm:$0xf] }
 0x20a   :  { %v437_v56 = vld [vmem:[#allocation3 + $0x21] sm:$0xff]  ;;  %817 = vmatpush.msk.msra.mxu2 %vm353_vm2, %v691_v63  ;;  %815 = vmatpush.msk.msra.mxu1 %vm353_vm2, %v691_v63 }
 0x20e   :  { %802 = vmatmul.msk.f32.gmra.mxu1 %vm74_vm1, %v435_v14 }
 0x20f   :  { %806 = vmatmul.msk.f32.gmra.mxu2 %vm74_vm1, %v423_v50 }
 0x210   :  { %810 = vmatmul.msk.f32.gmra.mxu3 %vm74_vm1, %v530_v52 }
 0x216   :  { %803 = vmatmul.msk.f32.gmra.mxu1 %vm74_vm1, %v436_v53 }
 0x217   :  { %807 = vmatmul.msk.f32.gmra.mxu2 %vm74_vm1, %v424_v54 }
 0x218   :  { %811 = vmatmul.msk.f32.gmra.mxu3 %vm74_vm1, %v531_v55 }
 0x21e   :  { %804 = vmatmul.msk.f32.gmra.mxu1 %vm74_vm1, %v437_v56 }
 0x21f   :  { %808 = vmatmul.msk.f32.gmra.mxu2 %vm74_vm1, %v425_v57 }
 0x220   :  { %812 = vmatmul.msk.f32.gmra.mxu3 %vm74_vm1, %v532_v58 }
 0x283   :  { %v476_v59 = vpop.f32.mrf.mxu1 }
 0x28a   :  { %v517_v61 = vpop.f32.mrf.mxu2 }
 0x28b   :  { %v571_v0 = vpop.f32.mrf.mxu3  ;;  %v479_v1 = vpop.f32.mrf.mxu1  ;;  %v518_v6 = vadd.f32 %v517_v61, %v476_v59 }
 0x28d   :  { %v1160_v11 = vadd.f32 %v571_v0, %v518_v6 }
 0x28f   :  { %v600_v16 = vmul.f32 %v1160_v11, %v1160_v11  ;;  %v587_v47 = vsel %vm74_vm1, %v1160_v11, 0.0 }
 0x291   :  { %v604_v21 = vsel %vm74_vm1, %v600_v16, 0.0 }
 0x292   :  { %v520_v2 = vpop.f32.mrf.mxu2 }
 0x293   :  { %v574_v3 = vpop.f32.mrf.mxu3  ;;  %v521_v4 = vadd.f32 %v520_v2, %v479_v1  ;;  %v482_v5 = vpop.f32.mrf.mxu1  ;;  %v675_v1 = vld [vmem:[%s1218_s5] sm:$0x1]  ;;  %s912_s5 = smov [#allocation9]  }
 0x295   :  { %v1158_v8 = vadd.f32 %v574_v3, %v521_v4 }
 0x297   :  { %v601_v13 = vmul.f32 %v1158_v8, %v1158_v8  ;;  %v588_v41 = vsel %vm74_vm1, %v1158_v8, 0.0 }
 0x298   :  { %v589_v51 = vadd.f32 %v588_v41, %v587_v47 }
 0x299   :  { %v605_v18 = vsel %vm74_vm1, %v601_v13, 0.0 }
 0x29a   :  { %v523_v7 = vpop.f32.mrf.mxu2  ;;  %v606_v25 = vadd.f32 %v605_v18, %v604_v21 }
 0x29b   :  { %v524_v9 = vadd.f32 %v523_v7, %v482_v5  ;;  %v577_v10 = vpop.f32.mrf.mxu3  ;;  %v485_v43 = vpop.f32.mrf.mxu1  ;;  %v688_v5 = vld [vmem:[%s1219_s6] sm:$0x1]  ;;  %s767_s6 = sshll.u32 %s912_s5, 4  ;;  %s768_s6 = int_to_ptr.vmem [resolvable:$true] %s767_s6 }
 0x29d   :  { %v1162_v12 = vadd.f32 %v577_v10, %v524_v9 }
 0x29f   :  { %v602_v42 = vmul.f32 %v1162_v12, %v1162_v12  ;;  %v590_v48 = vsel %vm74_vm1, %v1162_v12, 0.0 }
 0x2a0   :  { %v591_v26 = vadd.f32 %v590_v48, %v589_v51 }
 0x2a1   :  { %v607_v23 = vsel %vm74_vm1, %v602_v42, 0.0 }
 0x2a2   :  { %v526_v44 = vpop.f32.mrf.mxu2  ;;  %v608_v29 = vadd.f32 %v607_v23, %v606_v25 }
 0x2a3   :  { %v527_v49 = vadd.f32 %v526_v44, %v485_v43  ;;  %v580_v19 = vpop.f32.mrf.mxu3 }
 0x2a5   :  { %v586_v24 = vadd.f32 %v580_v19, %v527_v49 }
 0x2a7   :  { %v592_v27 = vsel %vm74_vm1, %v586_v24, 0.0  ;;  %v603_v28 = vmul.f32 %v586_v24, %v586_v24 }
 0x2a8   :  { %v593_v30 = vadd.f32 %v592_v27, %v591_v26 }
 0x2a9   :  { %v609_v31 = vsel %vm74_vm1, %v603_v28, 0.0 }
 0x2aa   :  { %v594_v32 = vrot.slane %v593_v30, 4  ;;  %v610_v33 = vadd.f32 %v609_v31, %v608_v29 }
 0x2ac   :  { %v595_v34 = vadd.f32 %v594_v32, %v593_v30  ;;  %v611_v35 = vrot.slane %v610_v33, 4 }
 0x2ae   :  { %v596_v36 = vrot.slane %v595_v34, 2  ;;  %v612_v37 = vadd.f32 %v611_v35, %v610_v33 }
 0x2b0   :  { %v597_v38 = vadd.f32 %v596_v36, %v595_v34  ;;  %v613_v39 = vrot.slane %v612_v37, 2 }
 0x2b2   :  { %v598_v40 = vrot.slane %v597_v38, 1  ;;  %v614_v45 = vadd.f32 %v613_v39, %v612_v37 }
 0x2b4   :  { %v599_v46 = vadd.f32 %v598_v40, %v597_v38  ;;  %v615_v60 = vrot.slane %v614_v45, 1 }
 0x2b6   :  { %813 = vmatmul.msk.f32.vlgmr.msra.gmra.mxu0 %vm74_vm1, %v599_v46  ;;  %v616_v62 = vadd.f32 %v615_v60, %v614_v45 }
 0x2be   :  { %814 = vmatmul.msk.f32.vlgmr.msrb.gmra.mxu0 %vm74_vm1, %v616_v62 }
 0x333   :  { %v645_v14 = vpop.f32.mrf.mxu0 }
 0x334   :  { %v671_v50 = vmul.f32 0.001953125, %v645_v14 }
 0x336   :  { %v673_v53 = vmul.f32 %v671_v50, %v671_v50 }
 0x33b   :  { %v668_v52 = vpop.f32.mrf.mxu0 }
 0x33c   :  { %v672_v54 = vmul.f32 0.001953125, %v668_v52 }
 0x33e   :  { %v674_v55 = vsub.f32 %v672_v54, %v673_v53 }
 0x340   :  { %v676_v56 = vadd.f32 1e-05, %v674_v55 }
 0x342   :  { %827 = vrsqrt.f32 %v676_v56  ;;  %vm683_vm8 = vweird.f32 %v676_v56 }
 0x348   :  { %v828_v57 = vpop.eup %827 }
 0x349   :  { %v678_v58 = vmul.f32 %v828_v57, %v676_v56  ;;  %vm684_vm7 = vweird.f32 %v828_v57 }
 0x34a   :  { %vm685_vm9 = vmor %vm683_vm8, %vm684_vm7 }
 0x34b   :  { %v679_v59 = vmul.f32 %v828_v57, %v678_v58 }
 0x34d   :  { %v680_v61 = vmul.f32 0.5, %v679_v59 }
 0x34f   :  { %v681_v0 = vsub.f32 1.5, %v680_v61 }
 0x351   :  { %v682_v2 = vmul.f32 %v828_v57, %v681_v0 }
 0x353   :  { %v686_v3 = vsel %vm685_vm9, %v828_v57, %v682_v2 }
 0x354   :  { %v687_v4 = vmul.f32 %v686_v3, %v675_v1 }
 0x356   :  { %v689_v6 = vmul.f32 %v687_v4, %v671_v50  ;;  %816 = vmatmul.msk.f32.vlgmr.msra.gmra.mxu1 %vm349_vm6, %v687_v4 }
 0x358   :  { %v690_v7 = vsub.f32 %v688_v5, %v689_v6 }
 0x35a   :  { %818 = vmatmul.msk.f32.vlgmr.msra.gmra.mxu2 %vm349_vm6, %v690_v7 }
 0x3d3   :  { %v715_v9 = vpop.f32.mrf.mxu1 }
 0x3d4   :  { %v741_v10 = vperm.slane %v715_v9, 0 }
 0x3d6   :  { %v742_v13 = vmul.f32 %v741_v10, %v1160_v11  ;;  %v743_v41 = vmul.f32 %v741_v10, %v1158_v8  ;;  %v744_v42 = vmul.f32 %v741_v10, %v1162_v12  ;;  %v745_v43 = vmul.f32 %v741_v10, %v586_v24 }
 0x3dd   :  { %v738_v16 = vpop.f32.mrf.mxu2 }
 0x3de   :  { %v746_v44 = vperm.slane %v738_v16, 0 }
 0x3e0   :  { %v747_v47 = vadd.f32 %v746_v44, %v742_v13  ;;  %v748_v18 = vadd.f32 %v746_v44, %v743_v41  ;;  %v749_v48 = vadd.f32 %v746_v44, %v744_v42  ;;  %v750_v49 = vadd.f32 %v746_v44, %v745_v43 }
 0x3e2   :  { %v751_v51 = vadd.f32 %v747_v47, %v986_v15  ;;  %v752_v19 = vadd.f32 %v748_v18, %v991_v17  ;;  %v753_v21 = vadd.f32 %v749_v48, %v1000_v20  ;;  %v754_v23 = vadd.f32 %v750_v49, %v1005_v22 }
 0x3e4   :  { %v755_v11 = vmax.f32 %v751_v51, 0.0  ;;  %v756_v25 = vmax.f32 %v752_v19, 0.0  ;;  %v757_v26 = vmax.f32 %v753_v21, 0.0  ;;  %v758_v8 = vmax.f32 %v754_v23, 0.0 }
 0x3e6   :  { %759 = vst.msk [vmem:[#allocation9] sm:$0xff] %vm74_vm1, %v755_v11 }
 0x3e7   :  { %760 = vst.msk [vmem:[#allocation9 + $0x8] sm:$0xff] %vm74_vm1, %v756_v25 }
 0x3e8   :  { %761 = vst.msk [vmem:[#allocation9 + $0x10] sm:$0xff] %vm74_vm1, %v757_v26 }
 0x3e9   :  { %762 = vst.msk [vmem:[#allocation9 + $0x18] sm:$0xff] %vm74_vm1, %v758_v8 }
 0x3ea   :  { %775 = dma.vmem_to_hbm [thread:$0]  %s768_s6, 512, %s770_s30, [#allocation6], %s908_s17, %s908_s17, %s909_s18  }
 0x3eb   :  { %905 = dma.done.wait [#allocation6], 512  }
 0x3ec   :  { %906 = vsyncadd [#allocation6], 4294966784 }
 0x3ed   :  { %780 = vsyncpa [#allocation5], 1 }
 0x3ee   :  { %781 = vsyncpa [#allocation8], 1 }
 0x3ef   :  { %782 = vsyncpa [#allocation6], 1 }

</bundles_post_ra>
